<compile_context>
chip_gen: v6e
topology: v6e:2x2x1
jax: 0.10.0
libtpu: 0.0.40
codegen_flags: <defaults>
</compile_context>

<pallas_src>
import jax
import jax.numpy as jnp
from jax.experimental import pallas as pl
from jax.experimental.pallas import tpu as pltpu


def _round_up(x, m):
    return ((x + m - 1) // m) * m


def _make_triplet_kernel(margin):
    def kernel(a_ref, p_ref, n_ref, o_ref):
        a = a_ref[...].astype(jnp.float32)
        p = p_ref[...].astype(jnp.float32)
        n = n_ref[...].astype(jnp.float32)
        d_ap = a - p
        d_an = a - n
        # Squared Euclidean distances (matches the module's calc_euclidean),
        # reduced over the feature axis; keepdims keeps clean 2-D (TB, 1) tiles.
        dist_pos = jnp.sum(d_ap * d_ap, axis=1, keepdims=True)   # (TB, 1)
        dist_neg = jnp.sum(d_an * d_an, axis=1, keepdims=True)   # (TB, 1)
        o_ref[...] = jnp.maximum(dist_pos - dist_neg + margin, 0.0)
    return kernel


def _tile_budget():
    """Generation-aware (per-input tile bytes, scoped vmem_limit_bytes)."""
    try:
        vmem_cap = int(pltpu.get_tpu_info().vmem_capacity_bytes)
    except Exception:
        vmem_cap = 64 * 1024 * 1024          # conservative (v7x-sized) fallback
    if vmem_cap >= 128 * 1024 * 1024:
        # v5e / v6e: 128 MiB physical VMEM -> bigger tiles, raised scoped limit.
        return 12 * 1024 * 1024, 96 * 1024 * 1024
    # v7x: 64 MiB physical -> 3 inputs x 2 buffers (lane-padded) + output <= ~40 MiB.
    return 4 * 1024 * 1024, 40 * 1024 * 1024


def triplet_loss(anchor, positive, negative, margin=1.0):
    """Pallas TPU implementation of TripletLoss.forward. Returns a scalar."""
    assert anchor.shape == positive.shape == negative.shape
    assert anchor.ndim == 2
    B, D = anchor.shape
    itemsize = jnp.dtype(anchor.dtype).itemsize

    # sublane-packing multiple: 8 for 32-bit, 16 for 16-bit, 32 for 8-bit dtypes
    sub = max(8, 32 // itemsize)
    # VMEM holds (8,128) tiles -> budget with the lane-padded feature width.
    d_padded = _round_up(D, 128)
    max_tile_bytes, vmem_limit = _tile_budget()

    # Largest batch tile whose lane-padded input block fits the per-input budget
    # (3 inputs x 2 pipeline buffers then stay inside the scoped VMEM limit).
    rows_by_vmem = max(sub, (max_tile_bytes // (d_padded * itemsize)) // sub * sub)
    tb = min(rows_by_vmem, _round_up(B, sub))          # never exceed padded batch
    # Keep >= 2 grid steps whenever B allows so "parallel" shards across both
    # v7x TensorCores (costs only one extra ~0.35us step on 1-TC chips).
    tb = min(tb, max(sub, _round_up(pl.cdiv(B, 2), sub)))
    num_tiles = pl.cdiv(B, tb)
    # TODO(synk): for huge D where a single (sub, d_padded) block overflows the
    # per-input budget, add a second grid axis over D with a distance accumulator.
    # TODO(synk): second-order: lane-dense / per-tile-partial-sum output instead
    # of the (tb, 1) masked-store writeback (output traffic is ~1% of input traffic).

    in_spec = pl.BlockSpec((tb, D), lambda i: (i, 0))
    per_row_losses = pl.pallas_call(
        _make_triplet_kernel(float(margin)),
        out_shape=jax.ShapeDtypeStruct((B, 1), jnp.float32),
        grid=(num_tiles,),
        in_specs=[in_spec, in_spec, in_spec],
        out_specs=pl.BlockSpec((tb, 1), lambda i: (i, 0)),
        compiler_params=pltpu.CompilerParams(
            dimension_semantics=("parallel",),      # independent tiles -> both TCs on v7x
            vmem_limit_bytes=vmem_limit,
        ),
        cost_estimate=pl.CostEstimate(
            flops=6 * B * D,
            transcendentals=0,
            bytes_accessed=3 * B * D * itemsize + B * 4,
        ),
    )(anchor, positive, negative)

    # Final reduction over exactly the B true rows in plain JAX.  Pallas clamps
    # the partial last output block's writeback, so padded rows never reach
    # per_row_losses and the ragged tail is correct for free.
    return jnp.mean(per_row_losses)


if __name__ == "__main__":
    def ref_loss(a, p, n, margin):
        dp = jnp.sum((a - p) ** 2, axis=1)
        dn = jnp.sum((a - n) ** 2, axis=1)
        return jnp.mean(jnp.maximum(dp - dn + margin, 0.0))

    root = jax.random.PRNGKey(0)
    k1, k2, k3, k4, k5, k6 = jax.random.split(root, 6)

    # primary small example, matching the PyTorch module's (batch, feature) input
    B, D = 8, 32
    anchor = jax.random.normal(k1, (B, D), dtype=jnp.float32)
    positive = jax.random.normal(k2, (B, D), dtype=jnp.float32)
    negative = jax.random.normal(k3, (B, D), dtype=jnp.float32)
    loss = triplet_loss(anchor, positive, negative, margin=1.0)
    jax.block_until_ready(loss)
    assert jnp.allclose(loss, ref_loss(anchor, positive, negative, 1.0),
                        rtol=1e-5, atol=1e-5), "primary check failed"

    # multi-tile + ragged-tail check: B=100 splits into 2 tiles (56 + 44 rows)
    # via the >=2-tile rule, exercising the partial last block path.
    B2, D2 = 100, 64
    a2 = jax.random.normal(k4, (B2, D2), dtype=jnp.float32)
    p2 = jax.random.normal(k5, (B2, D2), dtype=jnp.float32)
    n2 = jax.random.normal(k6, (B2, D2), dtype=jnp.float32)
    loss2 = triplet_loss(a2, p2, n2, margin=0.5)
    jax.block_until_ready(loss2)
    assert jnp.allclose(loss2, ref_loss(a2, p2, n2, 0.5),
                        rtol=1e-5, atol=1e-5), "tail-tile check failed"

    print("KERNEL_OK")
</pallas_src>

<mosaic_0001>
module attributes {stable_mosaic.version = 11 : i64} {
  func.func @kernel(%arg0: i32, %arg1: memref<8x32xf32, #tpu.memory_space<vmem>>, %arg2: memref<8x32xf32, #tpu.memory_space<vmem>>, %arg3: memref<8x32xf32, #tpu.memory_space<vmem>>, %arg4: memref<8x1xf32, #tpu.memory_space<vmem>>) attributes {dimension_semantics = [#tpu.dimension_semantics<parallel>], iteration_bounds = array<i64: 1>, scalar_prefetch = 0 : i64, scratch_operands = 0 : i64, tpu.core_type = #tpu.core_type<tc>, window_params = [{transform_indices = @transform_0, window_bounds = array<i64: 8, 32>}, {transform_indices = @transform_1, window_bounds = array<i64: 8, 32>}, {transform_indices = @transform_2, window_bounds = array<i64: 8, 32>}, {transform_indices = @transform_3, window_bounds = array<i64: 8, 1>}]} {
    %c0 = arith.constant 0 : index
    %c0_0 = arith.constant 0 : index
    %0 = vector.load %arg1[%c0, %c0_0] : memref<8x32xf32, #tpu.memory_space<vmem>>, vector<8x32xf32>
    %c0_1 = arith.constant 0 : index
    %c0_2 = arith.constant 0 : index
    %1 = vector.load %arg2[%c0_1, %c0_2] : memref<8x32xf32, #tpu.memory_space<vmem>>, vector<8x32xf32>
    %c0_3 = arith.constant 0 : index
    %c0_4 = arith.constant 0 : index
    %2 = vector.load %arg3[%c0_3, %c0_4] : memref<8x32xf32, #tpu.memory_space<vmem>>, vector<8x32xf32>
    %3 = arith.subf %0, %1 : vector<8x32xf32>
    %4 = arith.subf %0, %2 : vector<8x32xf32>
    %5 = arith.mulf %3, %3 : vector<8x32xf32>
    %cst = arith.constant dense<0.000000e+00> : vector<8xf32>
    %6 = vector.multi_reduction <add>, %5, %cst [1] : vector<8x32xf32> to vector<8xf32>
    %7 = vector.shape_cast %6 : vector<8xf32> to vector<8x1xf32>
    %8 = arith.mulf %4, %4 : vector<8x32xf32>
    %cst_5 = arith.constant dense<0.000000e+00> : vector<8xf32>
    %9 = vector.multi_reduction <add>, %8, %cst_5 [1] : vector<8x32xf32> to vector<8xf32>
    %10 = vector.shape_cast %9 : vector<8xf32> to vector<8x1xf32>
    %11 = arith.subf %7, %10 : vector<8x1xf32>
    %cst_6 = arith.constant 1.000000e+00 : f32
    %12 = vector.broadcast %cst_6 : f32 to vector<8x1xf32>
    %13 = arith.addf %11, %12 : vector<8x1xf32>
    %cst_7 = arith.constant 0.000000e+00 : f32
    %14 = vector.broadcast %cst_7 : f32 to vector<8x1xf32>
    %15 = arith.maximumf %13, %14 : vector<8x1xf32>
    %c0_8 = arith.constant 0 : index
    %c0_9 = arith.constant 0 : index
    %16 = vector.load %arg4[%c0_8, %c0_9] : memref<8x1xf32, #tpu.memory_space<vmem>>, vector<8x1xf32>
    tpu.vector_store %arg4[%c0_8, %c0_9], %15 {strides = array<i32>} : memref<8x1xf32, #tpu.memory_space<vmem>>, vector<8x1xf32>,
    return
  }
  func.func @transform_0(%arg0: i32) -> (i32, i32) {
    %c0_i32 = arith.constant 0 : i32
    %c0_i32_0 = arith.constant 0 : i32
    return %arg0, %c0_i32 : i32, i32
  }
  func.func @transform_1(%arg0: i32) -> (i32, i32) {
    %c0_i32 = arith.constant 0 : i32
    %c0_i32_0 = arith.constant 0 : i32
    return %arg0, %c0_i32 : i32, i32
  }
  func.func @transform_2(%arg0: i32) -> (i32, i32) {
    %c0_i32 = arith.constant 0 : i32
    %c0_i32_0 = arith.constant 0 : i32
    return %arg0, %c0_i32 : i32, i32
  }
  func.func @transform_3(%arg0: i32) -> (i32, i32) {
    %c0_i32 = arith.constant 0 : i32
    %c0_i32_0 = arith.constant 0 : i32
    return %arg0, %c0_i32 : i32, i32
  }
}

</mosaic_0001>

<bundles_post_ra>
// kernel: tpu_custom_call.1
= control target key start
LH: loop header
LB: loop body
LE: loop exit
PB: predicated region body
PF: predicated region fallthrough
CT: control target
= control target key end

     0   :  { %8 = vsyncpa [#allocation3], 0  ;;  %s176_s0 = inlined_call_operand.hbm [shape: f32[8,32], index: 0, kind: input, shape index: {}]   ;;  %s177_s1 = inlined_call_operand.hbm [shape: f32[8,32], index: 1, kind: input, shape index: {}]   ;;  %s178_s2 = inlined_call_operand.hbm [shape: f32[8,32], index: 2, kind: input, shape index: {}]   ;;  %s179_s3 = inlined_call_operand.vmem [shape: f32[8,1], index: 3, kind: output, shape index: {}]  }
   0x1   :  { %9 = vsyncpa [#allocation5], 0  ;;  %s141_s12 = smov [#allocation4]   ;;  %s142_s14 = smov [#allocation2]  }
   0x2   :  { %s26_s13 = sshll.u32 %s141_s12, 4  ;;  %s16_s15 = sshll.u32 %s142_s14, 4  ;;  %s27_s13 = int_to_ptr.vmem [resolvable:$true] %s26_s13  ;;  %s17_s15 = int_to_ptr.vmem [resolvable:$true] %s16_s15 }
   0x3   :  { %s85_s16 = scalar_lea.vmem %s27_s13, 128  ;;  %p90_p1 = scmp.lt.s32.totalorder %s27_s13, %s27_s13 }
   0x4   :  { %p86_p0 = scmp.ne.s32.totalorder %s27_s13, %s85_s16  ;;  %p91_p2 = scmp.lt.s32.totalorder %s85_s16, %s85_s16 }
   0x6   :  { %p92_p3 = por %p91_p2, %p90_p1 }
   0x8   :  { %p93_p4 = pnand %p92_p3, %p86_p0 }
   0xa   :  { %96 = shalt.err (!%p93_p4)
}
   0xb   :  { %29 = dma.hbm_to_vmem [thread:$0]  %s177_s1, 128, %s27_s13, [#allocation5]  }
   0xc   :  { %s105_s19 = scalar_lea.vmem %s17_s15, 128  ;;  %p110_p6 = scmp.lt.s32.totalorder %s17_s15, %s17_s15 }
   0xd   :  { %p106_p5 = scmp.ne.s32.totalorder %s17_s15, %s105_s19  ;;  %p111_p7 = scmp.lt.s32.totalorder %s105_s19, %s105_s19 }
   0xf   :  { %p112_p8 = por %p111_p7, %p110_p6 }
  0x11   :  { %p113_p9 = pnand %p112_p8, %p106_p5 }
  0x13   :  { %116 = shalt.err (!%p113_p9)
}
  0x14   :  { %19 = dma.hbm_to_vmem [thread:$0]  %s176_s0, 128, %s17_s15, [#allocation3]  }
  0x15   :  { %s143_s22 = smov [#allocation6]  }
  0x16   :  { %s36_s23 = sshll.u32 %s143_s22, 4  ;;  %s37_s23 = int_to_ptr.vmem [resolvable:$true] %s36_s23 }
  0x17   :  { %s125_s24 = scalar_lea.vmem %s37_s23, 128  ;;  %p130_p11 = scmp.lt.s32.totalorder %s37_s23, %s37_s23 }
  0x18   :  { %p126_p10 = scmp.ne.s32.totalorder %s37_s23, %s125_s24  ;;  %p131_p12 = scmp.lt.s32.totalorder %s125_s24, %s125_s24 }
  0x1a   :  { %p132_p13 = por %p131_p12, %p130_p11 }
  0x1c   :  { %p133_p0 = pnand %p132_p13, %p126_p10 }
  0x1e   :  { %136 = shalt.err (!%p133_p0)
}
  0x1f   :  { %39 = dma.hbm_to_vmem [thread:$0]  %s178_s2, 128, %s37_s23, [#allocation5]  }
  0x20   :  { %137 = dma.done.wait [#allocation3], 128  }
  0x21   :  { %138 = vsyncadd [#allocation3], 4294967168 }
  0x22   :  { %139 = dma.done.wait [#allocation5], 256  }
  0x23   :  { %140 = vsyncadd [#allocation5], 4294967040  ;;  %v49_v0 = vld [vmem:[#allocation2] sm:$0xff]  ;;  %v50_v1 = vld [vmem:[#allocation4] sm:$0xff]  ;;  %vm55_vm0 = vcmask 261120   ;;  %vm66_vm1 = vcmask 7168  }
  0x24   :  { %v51_v2 = vld [vmem:[#allocation6] sm:$0xff]  ;;  %v52_v3 = vsub.f32 %v49_v0, %v50_v1 }
  0x25   :  { %v53_v4 = vsub.f32 %v49_v0, %v51_v2 }
  0x26   :  { %v54_v5 = vmul.f32 %v52_v3, %v52_v3 }
  0x27   :  { %v59_v6 = vmul.f32 %v53_v4, %v53_v4 }
  0x28   :  { %v56_v7 = vsel %vm55_vm0, %v54_v5, 0.0 }
  0x29   :  { %57 = vadd.xlane.f32.xlu0 %v56_v7  ;;  %v60_v8 = vsel %vm55_vm0, %v59_v6, 0.0 }
  0x2d   :  { %61 = vadd.xlane.f32.xlu0 %v60_v8 }
  0xb2   :  { %v58_v9 = vpop.xlane.xlu0 %57 }
  0xb6   :  { %v62_v10 = vpop.xlane.xlu0 %61 }
  0xb7   :  { %v63_v11 = vsub.f32 %v58_v9, %v62_v10 }
  0xb9   :  { %v64_v12 = vadd.f32 1.0, %v63_v11 }
  0xbb   :  { %v65_v13 = vmax.f32 %v64_v12, 0.0 }
  0xbd   :  { %67 = vst.msk [vmem:[%s179_s3] sm:$0xff] %vm66_vm1, %v65_v13 }
  0xbe   :  { %72 = vsyncpa [#allocation3], 1 }
  0xbf   :  { %73 = vsyncpa [#allocation5], 1 }

</bundles_post_ra>
